<compile_context>
chip_gen: v5e
topology: v5e:2x2
jax: 0.10.0
libtpu: 0.0.40
codegen_flags: <defaults>
</compile_context>

<pallas_src>
import functools

import jax
import jax.numpy as jnp
from jax.experimental import pallas as pl
from jax.experimental.pallas import tpu as pltpu

# Module hyper-parameters (small, consistent with the module's forward).
BATCH = 16
INPUT_SIZE = 32
NUM_EXPERTS = 8
TOP_K = 2

_TARGET_TILE_BYTES = 4 << 20   # 2-8 MiB x-tile sweet spot across v5e/v6e/v7x
_SINGLE_TILE_ROWS = 512        # <= this: one whole-batch tile (step overhead dominates)
_LANE_MULTIPLE = 256           # keeps every block lane/MXU aligned on all generations


def _gating_kernel(x_ref, w_ref, idx_ref, gate_ref, *, top_k):
    # x_ref:    (BLOCK_B, D)          tokens for this grid step (native dtype)
    # w_ref:    (E, D)                nn.Linear weight, untransposed
    # idx_ref:  (top_k, BLOCK_B) i32  lane-dense output
    # gate_ref: (top_k, BLOCK_B)      lane-dense output, original x dtype
    e = w_ref.shape[0]
    b = x_ref.shape[0]
    idx_bits = max(1, (e - 1).bit_length())
    low_mask = (1 << idx_bits) - 1

    # logits^T = W @ x^T  ->  [E, BLOCK_B]; batch stays on the lane axis.
    # Native-dtype operands straight to the MXU, f32 accumulation.
    # TODO(synk): if the Mosaic dump ever shows a large vxpose of the x tile
    # feeding this NT dot at 32K-row tiles, compute logits as [BLOCK_B, E] and
    # transpose only the small result instead (4x less data through the XLU).
    logits_t = jax.lax.dot_general(
        w_ref[...], x_ref[...],
        dimension_numbers=(((1,), (1,)), ((), ())),
        preferred_element_type=jnp.float32)

    # ---- pack (value, index) into one monotone-sortable int32 key ----
    bits = pltpu.bitcast(logits_t, jnp.int32)
    # Order-preserving f32 -> signed-int32 map: flip magnitude bits of
    # negatives (sign bit untouched), so signed int compare == float compare.
    okey = bits ^ jnp.where(bits < 0, jnp.int32(0x7FFFFFFF), jnp.int32(0))
    row = jax.lax.broadcasted_iota(jnp.int32, (e, b), 0)  # hoisted, loop-invariant
    # Low bits hold (e-1-row): on equal (quantized) logits the lowest expert
    # index wins the max, matching torch.topk / lax.top_k tie-breaking.
    key = (okey & jnp.int32(~low_mask)) | (jnp.int32(e - 1) - row)

    neg = jnp.int32(jnp.iinfo(jnp.int32).min)

    # Iterative top-(k+1): ONE max-reduce per round over the expert (sublane)
    # axis.  Python-unrolled (k+1 is tiny) so the LLO scheduler sees it all.
    work = key
    kept = []
    for i in range(top_k + 1):
        best = jnp.max(work, axis=0, keepdims=True)   # [1, B]
        if i >= 1:                                    # reference drops rank 0
            kept.append(best)
        work = jnp.where(work == best, neg, work)

    best_keys = jnp.concatenate(kept, axis=0)         # [top_k, B] int32

    # Decode expert index and (3-ulp-quantized) logit value from the key.
    idx = jnp.int32(e - 1) - (best_keys & jnp.int32(low_mask))
    vk = best_keys & jnp.int32(~low_mask)
    vbits = vk ^ jnp.where(vk < 0, jnp.int32(0x7FFFFFFF), jnp.int32(0))
    vals = pltpu.bitcast(vbits, jnp.float32)          # [top_k, B]

    # Softmax over the kept top-k logits (small sublane axis).
    if top_k == 2:
        # 2-way softmax == sigmoid of the difference; exp runs on the EUP.
        d = vals[1:2, :] - vals[0:1, :]               # <= 0 (rank ordered)
        g0 = 1.0 / (1.0 + jnp.exp(d))
        gates = jnp.concatenate([g0, 1.0 - g0], axis=0)
    else:
        mx = jnp.max(vals, axis=0, keepdims=True)
        ex = jnp.exp(vals - mx)
        gates = ex * pl.reciprocal(
            jnp.sum(ex, axis=0, keepdims=True), approx=True)

    idx_ref[...] = idx
    gate_ref[...] = gates.astype(gate_ref.dtype)

    # TODO(synk): training-branch aux loss (self.loss side-effect) not
    # implemented; the forward's return values do not include it.


def _choose_block_b(batch, row_bytes):
    """Batch-tile rows sized by BYTES (~4 MiB of x per step), rounded to a
    256-multiple, and <= ceil(batch/2) so the 'parallel' grid has at least two
    steps (keeps both v7x TensorCores busy).  Small batches use one tile."""
    if batch <= _SINGLE_TILE_ROWS:
        return batch
    cap = max(_LANE_MULTIPLE,
              (_TARGET_TILE_BYTES // row_bytes) // _LANE_MULTIPLE * _LANE_MULTIPLE)
    half = pl.cdiv(pl.cdiv(batch, 2), _LANE_MULTIPLE) * _LANE_MULTIPLE
    return min(cap, half)


def _vmem_limit_bytes(block_b, d, e, top_k, in_itemsize, out_itemsize):
    """Explicit scoped-VMEM budget: double-buffered inputs/outputs plus a
    generous allowance for the [E, BLOCK_B] i32/f32 selection temporaries.
    Clamped to [32 MiB, 48 MiB]: lifts the 16/32 MiB default scoped caps but
    stays safely inside v7x's 64 MiB physical VMEM."""
    x_tile = block_b * d * in_itemsize
    w_tile = e * d * in_itemsize
    outs = top_k * block_b * (4 + out_itemsize)
    temps = 12 * e * block_b * 4           # keys / work copies / vals / gates
    est = 2 * x_tile + 2 * w_tile + 2 * outs + temps + (2 << 20)
    return int(min(max(est * 3 // 2, 32 << 20), 48 << 20))


def top_k_gating_lane_major(x, weight, top_k=TOP_K, *, compute_dtype=None,
                            xla_fallback_below=0):
    """Gating forward with lane-major (kernel-native) outputs.

    x: [B, D]; weight: [E, D] (nn.Linear weight, no bias).
    Returns (indices [top_k, B] int32, gates [top_k, B] x.dtype): ranks
    1..top_k of the (top_k+1)-way topk and their softmax, i.e. the PyTorch
    forward's values in transposed layout.  Consume this layout directly in a
    downstream dispatch/scatter to avoid an extra HBM transpose pass.
    """
    B, D = x.shape
    E, D2 = weight.shape
    assert D == D2 and top_k <= E

    out_dtype = x.dtype
    if compute_dtype is not None:          # e.g. jnp.bfloat16: halves x HBM bytes
        x = x.astype(compute_dtype)
    w = weight.astype(x.dtype)

    if B < xla_fallback_below:             # tiny batches: launch overhead dominates
        logits = jnp.dot(x, w.T, preferred_element_type=jnp.float32)
        vals, inds = jax.lax.top_k(logits, top_k + 1)
        gates = jax.nn.softmax(vals[:, 1:], axis=-1).astype(out_dtype)
        return inds[:, 1:].astype(jnp.int32).T, gates.T

    row_bytes = D * x.dtype.itemsize
    block_b = _choose_block_b(B, row_bytes)
    # Ragged tails are handled by Pallas's non-divisible edge blocks (garbage
    # rows in the last block are never written back) -- no wrapper jnp.pad.
    grid = (pl.cdiv(B, block_b),)

    idx_t, gates_t = pl.pallas_call(
        functools.partial(_gating_kernel, top_k=top_k),
        out_shape=(
            jax.ShapeDtypeStruct((top_k, B), jnp.int32),
            jax.ShapeDtypeStruct((top_k, B), out_dtype),
        ),
        grid=grid,
        in_specs=[
            pl.BlockSpec((block_b, D), lambda i: (i, 0)),
            pl.BlockSpec((E, D), lambda i: (0, 0)),
        ],
        out_specs=(
            pl.BlockSpec((top_k, block_b), lambda i: (0, i)),
            pl.BlockSpec((top_k, block_b), lambda i: (0, i)),
        ),
        compiler_params=pltpu.CompilerParams(
            dimension_semantics=("parallel",),
            vmem_limit_bytes=_vmem_limit_bytes(
                block_b, D, E, top_k, x.dtype.itemsize,
                jnp.dtype(out_dtype).itemsize),
        ),
    )(x, w)
    return idx_t, gates_t


def top_k_gating(x, weight, top_k=TOP_K, **kwargs):
    """PyTorch-layout forward: ([B, top_k] int32 indices, [B, top_k] gates).

    The two .T transposes below are an extra XLA pass over 2*B*top_k elements;
    for large batches prefer top_k_gating_lane_major() and keep [top_k, B].
    """
    idx_t, gates_t = top_k_gating_lane_major(x, weight, top_k, **kwargs)
    return idx_t.T, gates_t.T


if __name__ == "__main__":
    key = jax.random.PRNGKey(0)
    kx, kw, kx2 = jax.random.split(key, 3)

    # nn.Linear default init: U(-1/sqrt(in), 1/sqrt(in)), weight shape [E, D].
    bound = 1.0 / (INPUT_SIZE ** 0.5)
    weight = jax.random.uniform(
        kw, (NUM_EXPERTS, INPUT_SIZE), dtype=jnp.float32,
        minval=-bound, maxval=bound)

    # ---- small batch (module's nominal shape): strict check vs lax.top_k ----
    x = jax.random.normal(kx, (BATCH, INPUT_SIZE), dtype=jnp.float32)
    top_k_indices, top_k_gates = top_k_gating(x, weight)
    jax.block_until_ready((top_k_indices, top_k_gates))

    logits_ref = (x @ weight.T).astype(jnp.float32)
    vals_ref, inds_ref = jax.lax.top_k(logits_ref, TOP_K + 1)
    ref_idx = inds_ref[:, 1:].astype(jnp.int32)
    ref_gates = jax.nn.softmax(vals_ref[:, 1:], axis=1).astype(x.dtype)

    assert top_k_indices.shape == (BATCH, TOP_K)
    assert top_k_gates.shape == (BATCH, TOP_K)
    assert jnp.array_equal(top_k_indices, ref_idx), "index mismatch (small batch)"
    assert jnp.allclose(top_k_gates, ref_gates, atol=1e-5, rtol=1e-5), \
        "gate mismatch (small batch)"

    # ---- larger, non-block-divisible batch: exercises the multi-step grid,
    #      edge-block masking (no wrapper pad) and the lane-major output path.
    #      Checks are phrased tie-robustly (selected logits + their softmax).
    B2 = 1000
    x2 = jax.random.normal(kx2, (B2, INPUT_SIZE), dtype=jnp.float32)
    idx2_t, gates2_t = top_k_gating_lane_major(x2, weight)   # [TOP_K, B2]
    jax.block_until_ready((idx2_t, gates2_t))

    assert idx2_t.shape == (TOP_K, B2) and gates2_t.shape == (TOP_K, B2)
    logits2 = (x2 @ weight.T).astype(jnp.float32)
    vals2_ref, _ = jax.lax.top_k(logits2, TOP_K + 1)
    sel = jnp.take_along_axis(logits2, idx2_t.T, axis=1)      # [B2, TOP_K]
    assert jnp.allclose(sel, vals2_ref[:, 1:], atol=1e-5, rtol=1e-5), \
        "selection mismatch (large batch)"
    assert jnp.allclose(gates2_t.T, jax.nn.softmax(sel, axis=1),
                        atol=1e-5, rtol=1e-5), "gate mismatch (large batch)"

    print("KERNEL_OK")
</pallas_src>

<mosaic_0001>
module attributes {stable_mosaic.version = 11 : i64} {
  func.func @_gating_kernel(%arg0: i32, %arg1: memref<16x32xf32, #tpu.memory_space<vmem>>, %arg2: memref<8x32xf32, #tpu.memory_space<vmem>>, %arg3: memref<2x16xi32, #tpu.memory_space<vmem>>, %arg4: memref<2x16xf32, #tpu.memory_space<vmem>>) attributes {dimension_semantics = [#tpu.dimension_semantics<parallel>], iteration_bounds = array<i64: 1>, scalar_prefetch = 0 : i64, scratch_operands = 0 : i64, tpu.core_type = #tpu.core_type<tc>, window_params = [{transform_indices = @transform_0, window_bounds = array<i64: 16, 32>}, {pipeline_mode = #tpu.pipeline_mode<synchronous>, transform_indices = @transform_1, window_bounds = array<i64: 8, 32>}, {transform_indices = @transform_2, window_bounds = array<i64: 2, 16>}, {transform_indices = @transform_3, window_bounds = array<i64: 2, 16>}]} {
    %c0 = arith.constant 0 : index
    %c0_0 = arith.constant 0 : index
    %0 = vector.load %arg2[%c0, %c0_0] : memref<8x32xf32, #tpu.memory_space<vmem>>, vector<8x32xf32>
    %c0_1 = arith.constant 0 : index
    %c0_2 = arith.constant 0 : index
    %1 = vector.load %arg1[%c0_1, %c0_2] : memref<16x32xf32, #tpu.memory_space<vmem>>, vector<16x32xf32>
    %cst = arith.constant dense<0.000000e+00> : vector<8x16xf32>
    %2 = tpu.matmul %0, %1, %cst {dimension_numbers = #tpu.dot_dimension_numbers<[1], [1], [0], [0], [0, 0, 1, 0], [], []>} : vector<8x32xf32>, vector<16x32xf32>, vector<8x16xf32> -> vector<8x16xf32>
    %3 = tpu.bitcast %2 : vector<8x16xf32> -> vector<8x16xi32>
    %c0_i32 = arith.constant 0 : i32
    %4 = vector.broadcast %c0_i32 : i32 to vector<8x16xi32>
    %5 = arith.cmpi slt, %3, %4 : vector<8x16xi32>
    %c2147483647_i32 = arith.constant 2147483647 : i32
    %c0_i32_3 = arith.constant 0 : i32
    %6 = vector.broadcast %c2147483647_i32 : i32 to vector<8x16xi32>
    %7 = vector.broadcast %c0_i32_3 : i32 to vector<8x16xi32>
    %8 = arith.select %5, %6, %7 : vector<8x16xi1>, vector<8x16xi32>
    %9 = arith.xori %3, %8 : vector<8x16xi32>
    %10 = tpu.iota {dimensions = array<i32: 0>} : vector<8x16xi32>
    %c-8_i32 = arith.constant -8 : i32
    %11 = vector.broadcast %c-8_i32 : i32 to vector<8x16xi32>
    %12 = arith.andi %9, %11 : vector<8x16xi32>
    %c7_i32 = arith.constant 7 : i32
    %13 = vector.broadcast %c7_i32 : i32 to vector<8x16xi32>
    %14 = arith.subi %13, %10 : vector<8x16xi32>
    %15 = arith.ori %12, %14 : vector<8x16xi32>
    %cst_4 = arith.constant dense<-2147483648> : vector<16xi32>
    %16 = vector.multi_reduction <maxsi>, %15, %cst_4 [0] : vector<8x16xi32> to vector<16xi32>
    %17 = vector.shape_cast %16 : vector<16xi32> to vector<1x16xi32>
    %18 = vector.broadcast %17 : vector<1x16xi32> to vector<8x16xi32>
    %19 = arith.cmpi eq, %15, %18 : vector<8x16xi32>
    %c-2147483648_i32 = arith.constant -2147483648 : i32
    %20 = vector.broadcast %c-2147483648_i32 : i32 to vector<8x16xi32>
    %21 = arith.select %19, %20, %15 : vector<8x16xi1>, vector<8x16xi32>
    %cst_5 = arith.constant dense<-2147483648> : vector<16xi32>
    %22 = vector.multi_reduction <maxsi>, %21, %cst_5 [0] : vector<8x16xi32> to vector<16xi32>
    %23 = vector.shape_cast %22 : vector<16xi32> to vector<1x16xi32>
    %24 = vector.broadcast %23 : vector<1x16xi32> to vector<8x16xi32>
    %25 = arith.cmpi eq, %21, %24 : vector<8x16xi32>
    %c-2147483648_i32_6 = arith.constant -2147483648 : i32
    %26 = vector.broadcast %c-2147483648_i32_6 : i32 to vector<8x16xi32>
    %27 = arith.select %25, %26, %21 : vector<8x16xi1>, vector<8x16xi32>
    %cst_7 = arith.constant dense<-2147483648> : vector<16xi32>
    %28 = vector.multi_reduction <maxsi>, %27, %cst_7 [0] : vector<8x16xi32> to vector<16xi32>
    %29 = vector.shape_cast %28 : vector<16xi32> to vector<1x16xi32>
    %30 = tpu.concatenate %23, %29 in 0 : vector<1x16xi32>, vector<1x16xi32> -> vector<2x16xi32>
    %c7_i32_8 = arith.constant 7 : i32
    %31 = vector.broadcast %c7_i32_8 : i32 to vector<2x16xi32>
    %32 = arith.andi %30, %31 : vector<2x16xi32>
    %c7_i32_9 = arith.constant 7 : i32
    %33 = vector.broadcast %c7_i32_9 : i32 to vector<2x16xi32>
    %34 = arith.subi %33, %32 : vector<2x16xi32>
    %c-8_i32_10 = arith.constant -8 : i32
    %35 = vector.broadcast %c-8_i32_10 : i32 to vector<2x16xi32>
    %36 = arith.andi %30, %35 : vector<2x16xi32>
    %c0_i32_11 = arith.constant 0 : i32
    %37 = vector.broadcast %c0_i32_11 : i32 to vector<2x16xi32>
    %38 = arith.cmpi slt, %36, %37 : vector<2x16xi32>
    %c2147483647_i32_12 = arith.constant 2147483647 : i32
    %c0_i32_13 = arith.constant 0 : i32
    %39 = vector.broadcast %c2147483647_i32_12 : i32 to vector<2x16xi32>
    %40 = vector.broadcast %c0_i32_13 : i32 to vector<2x16xi32>
    %41 = arith.select %38, %39, %40 : vector<2x16xi1>, vector<2x16xi32>
    %42 = arith.xori %36, %41 : vector<2x16xi32>
    %43 = tpu.bitcast %42 : vector<2x16xi32> -> vector<2x16xf32>
    %44 = vector.extract_strided_slice %43 {offsets = [1, 0], sizes = [1, 16], strides = [1, 1]} : vector<2x16xf32> to vector<1x16xf32>
    %45 = vector.extract_strided_slice %43 {offsets = [0, 0], sizes = [1, 16], strides = [1, 1]} : vector<2x16xf32> to vector<1x16xf32>
    %46 = arith.subf %44, %45 : vector<1x16xf32>
    %47 = math.exp %46 : vector<1x16xf32>
    %cst_14 = arith.constant 1.000000e+00 : f32
    %48 = vector.broadcast %cst_14 : f32 to vector<1x16xf32>
    %49 = arith.addf %48, %47 : vector<1x16xf32>
    %cst_15 = arith.constant 1.000000e+00 : f32
    %50 = vector.broadcast %cst_15 : f32 to vector<1x16xf32>
    %51 = arith.divf %50, %49 : vector<1x16xf32>
    %cst_16 = arith.constant 1.000000e+00 : f32
    %52 = vector.broadcast %cst_16 : f32 to vector<1x16xf32>
    %53 = arith.subf %52, %51 : vector<1x16xf32>
    %54 = tpu.concatenate %51, %53 in 0 : vector<1x16xf32>, vector<1x16xf32> -> vector<2x16xf32>
    %c0_17 = arith.constant 0 : index
    %c0_18 = arith.constant 0 : index
    %55 = vector.load %arg3[%c0_17, %c0_18] : memref<2x16xi32, #tpu.memory_space<vmem>>, vector<2x16xi32>
    tpu.vector_store %arg3[%c0_17, %c0_18], %34 {strides = array<i32>} : memref<2x16xi32, #tpu.memory_space<vmem>>, vector<2x16xi32>,
    %c0_19 = arith.constant 0 : index
    %c0_20 = arith.constant 0 : index
    %56 = vector.load %arg4[%c0_19, %c0_20] : memref<2x16xf32, #tpu.memory_space<vmem>>, vector<2x16xf32>
    tpu.vector_store %arg4[%c0_19, %c0_20], %54 {strides = array<i32>} : memref<2x16xf32, #tpu.memory_space<vmem>>, vector<2x16xf32>,
    return
  }
  func.func @transform_0(%arg0: i32) -> (i32, i32) {
    %c0_i32 = arith.constant 0 : i32
    %c0_i32_0 = arith.constant 0 : i32
    return %arg0, %c0_i32 : i32, i32
  }
  func.func @transform_1(%arg0: i32) -> (i32, i32) {
    %c0_i32 = arith.constant 0 : i32
    %c0_i32_0 = arith.constant 0 : i32
    %c0_i32_1 = arith.constant 0 : i32
    return %c0_i32, %c0_i32_0 : i32, i32
  }
  func.func @transform_2(%arg0: i32) -> (i32, i32) {
    %c0_i32 = arith.constant 0 : i32
    %c0_i32_0 = arith.constant 0 : i32
    return %c0_i32, %arg0 : i32, i32
  }
  func.func @transform_3(%arg0: i32) -> (i32, i32) {
    %c0_i32 = arith.constant 0 : i32
    %c0_i32_0 = arith.constant 0 : i32
    return %c0_i32, %arg0 : i32, i32
  }
}

</mosaic_0001>

<bundles_post_ra>
// kernel: tpu_custom_call.1
= control target key start
LH: loop header
LB: loop body
LE: loop exit
PB: predicated region body
PF: predicated region fallthrough
CT: control target
= control target key end

     0   :  { %9 = vsyncpa [#allocation3], 0  ;;  %s358_s0 = inlined_call_operand.hbm [shape: f32[16,32], index: 0, kind: input, shape index: {}]   ;;  %s359_s1 = inlined_call_operand.hbm [shape: f32[8,32], index: 1, kind: input, shape index: {}]   ;;  %s360_s2 = inlined_call_operand.hbm [shape: s32[2,16], index: 2, kind: output, shape index: {0}]   ;;  %s361_s3 = inlined_call_operand.hbm [shape: f32[2,16], index: 3, kind: output, shape index: {1}]  }
   0x1   :  { %10 = vsyncpa [#allocation6], 0 }
   0x2   :  { %11 = vsyncpa [#allocation4], 0 }
   0x3   :  { %12 = vsyncpa [#allocation9], 0  ;;  %s17_s14 = sshll.u32 %s358_s0, 4  ;;  %s312_s15 = smov [#allocation2]   ;;  %s18_s14 = int_to_ptr.hbm [resolvable:$true] %s17_s14 }
   0x4   :  { %s19_s16 = sshll.u32 %s312_s15, 4  ;;  %s31_s19 = sshll.u32 %s359_s1, 4  ;;  %s20_s16 = int_to_ptr.vmem [resolvable:$true] %s19_s16  ;;  %s32_s19 = int_to_ptr.hbm [resolvable:$true] %s31_s19 }
   0x5   :  { %s313_s20 = smov 128   ;;  %s314_s21 = smov 8  }
   0x6   :  { %25 = dma.hbm_to_vmem [thread:$0]  %s18_s14, 256, %s20_s16, [#allocation3], %s313_s20, %s313_s20, %s314_s21  }
   0x7   :  { %s315_s22 = smov [#allocation5]  }
   0x8   :  { %s33_s23 = sshll.u32 %s315_s22, 4  ;;  %s34_s23 = int_to_ptr.vmem [resolvable:$true] %s33_s23 }
   0x9   :  { %36 = dma.hbm_to_vmem [thread:$0]  %s32_s19, 128, %s34_s23, [#allocation6]  }
   0xa   :  { %304 = dma.done.wait [#allocation3], 256  }
   0xb   :  { %305 = vsyncadd [#allocation3], 4294967040 }
   0xc   :  { %306 = dma.done.wait [#allocation6], 128  }
   0xd   :  { %307 = vsyncadd [#allocation6], 4294967168  ;;  %vm48_vm0 = vcmask 261120   ;;  %v47_v0 = vld [vmem:[#allocation2 + $0x8] sm:$0xff]  ;;  %v46_v1 = vld [vmem:[#allocation2] sm:$0xff]  ;;  %v82_v3 = vlaneseq  ;;  %v316_v6 = vmov 0  }
   0xe   :  { %194 = vmatpush.xpose.msk.msra.mxu0 %vm48_vm0, %v47_v0  ;;  %v45_v2 = vld [vmem:[#allocation5] sm:$0xff]  ;;  %vm87_vm2 = vcmask 130048   ;;  %vm122_vm13 = vcmask 1040384   ;;  %s317_s0 = smov [#allocation7]   ;;  %s167_s26 = sshll.u32 %s360_s2, 4  ;;  %vm157_vm15 = vcmask 123904   ;;  %s168_s26 = int_to_ptr.hbm [resolvable:$true] %s167_s26 }
   0xf   :  { %v83_v4 = vshrl.u32 %v82_v3, 7  ;;  %s165_s1 = sshll.u32 %s317_s0, 4  ;;  %s318_s2 = smov [#allocation8]   ;;  %s166_s1 = int_to_ptr.vmem [resolvable:$true] %s165_s1 }
  0x10   :  { %s176_s27 = sshll.u32 %s318_s2, 4  ;;  %s178_s30 = sshll.u32 %s361_s3, 4  ;;  %s177_s27 = int_to_ptr.vmem [resolvable:$true] %s176_s27  ;;  %s179_s30 = int_to_ptr.hbm [resolvable:$true] %s178_s30 }
  0x11   :  { %v85_v9 = vsub.s32 7, %v83_v4 }
  0x12   :  { %195 = vmatpush.xpose.msk.msra.mxu0 %vm48_vm0, %v46_v1 }
  0x15   :  { %196 = vmatmul.msk.f32.vlgmr.msra.gmra.mxu0 %vm48_vm0, %v45_v2 }
  0x92   :  { %v75_v5 = vpop.f32.mrf.mxu0 }
  0x93   :  { %vm79_vm1 = vcmp.lt.s32.totalorder %v75_v5, 0 }
  0x94   :  { %v80_v7 = vsel %vm79_vm1, 2147483647, %v316_v6 }
  0x95   :  { %v81_v8 = vxor.u32 %v80_v7, %v75_v5 }
  0x97   :  { %v84_v10 = vand.u32 4294967288, %v81_v8 }
  0x99   :  { %v86_v11 = vor.u32 %v85_v9, %v84_v10 }
  0x9b   :  { %v88_v12 = vsel %vm87_vm2, %v86_v11, 2147483648 }
  0x9c   :  { %v89_v13 = vrot.slane %v88_v12, 4 }
  0x9e   :  { %vm90_vm3 = vcmp.gt.s32.totalorder %v88_v12, %v89_v13 }
  0x9f   :  { %v91_v14 = vsel %vm90_vm3, %v88_v12, %v89_v13 }
  0xa0   :  { %v92_v15 = vrot.slane %v91_v14, 2 }
  0xa2   :  { %vm93_vm4 = vcmp.gt.s32.totalorder %v91_v14, %v92_v15 }
  0xa3   :  { %v94_v16 = vsel %vm93_vm4, %v91_v14, %v92_v15 }
  0xa4   :  { %v95_v17 = vrot.slane %v94_v16, 1 }
  0xa6   :  { %vm96_vm5 = vcmp.gt.s32.totalorder %v94_v16, %v95_v17 }
  0xa7   :  { %v97_v18 = vsel %vm96_vm5, %v94_v16, %v95_v17 }
  0xa8   :  { %vm98_vm6 = vcmp.eq.s32.totalorder %v86_v11, %v97_v18 }
  0xa9   :  { %v99_v19 = vsel %vm98_vm6, 2147483648, %v86_v11 }
  0xaa   :  { %v100_v20 = vsel %vm87_vm2, %v99_v19, 2147483648 }
  0xab   :  { %v101_v21 = vrot.slane %v100_v20, 4 }
  0xad   :  { %vm102_vm7 = vcmp.gt.s32.totalorder %v100_v20, %v101_v21 }
  0xae   :  { %v103_v22 = vsel %vm102_vm7, %v100_v20, %v101_v21 }
  0xaf   :  { %v104_v23 = vrot.slane %v103_v22, 2 }
  0xb1   :  { %vm105_vm8 = vcmp.gt.s32.totalorder %v103_v22, %v104_v23 }
  0xb2   :  { %v106_v24 = vsel %vm105_vm8, %v103_v22, %v104_v23 }
  0xb3   :  { %v107_v25 = vrot.slane %v106_v24, 1 }
  0xb5   :  { %vm108_vm9 = vcmp.gt.s32.totalorder %v106_v24, %v107_v25 }
  0xb6   :  { %v109_v26 = vsel %vm108_vm9, %v106_v24, %v107_v25 }
  0xb7   :  { %vm110_vm10 = vcmp.eq.s32.totalorder %v99_v19, %v109_v26 }
  0xb8   :  { %v111_v27 = vsel %vm110_vm10, 2147483648, %v99_v19 }
  0xb9   :  { %v112_v28 = vsel %vm87_vm2, %v111_v27, 2147483648 }
  0xba   :  { %v113_v29 = vrot.slane %v112_v28, 4 }
  0xbc   :  { %vm114_vm11 = vcmp.gt.s32.totalorder %v112_v28, %v113_v29 }
  0xbd   :  { %v115_v30 = vsel %vm114_vm11, %v112_v28, %v113_v29 }
  0xbe   :  { %v116_v31 = vrot.slane %v115_v30, 2 }
  0xc0   :  { %vm117_vm12 = vcmp.gt.s32.totalorder %v115_v30, %v116_v31 }
  0xc1   :  { %v118_v32 = vsel %vm117_vm12, %v115_v30, %v116_v31 }
  0xc2   :  { %v119_v33 = vrot.slane %v118_v32, 1 }
  0xc4   :  { %vm120_vm14 = vcmp.gt.s32.totalorder %v118_v32, %v119_v33 }
  0xc5   :  { %v121_v34 = vsel %vm120_vm14, %v118_v32, %v119_v33 }
  0xc6   :  { %v123_v35 = vsel %vm122_vm13, %v109_v26, %v121_v34 }
  0xc7   :  { %v126_v36 = vand.u32 4294967288, %v123_v35  ;;  %v124_v37 = vand.u32 7, %v123_v35 }
  0xc9   :  { %vm127_vm0 = vcmp.lt.s32.totalorder %v126_v36, 0  ;;  %v125_v38 = vsub.s32 7, %v124_v37 }
  0xca   :  { %v128_v39 = vsel %vm127_vm0, 2147483647, %v316_v6 }
  0xcb   :  { %v129_v40 = vxor.u32 %v128_v39, %v126_v36  ;;  %158 = vst.msk [vmem:[#allocation7] sm:$0x3] %vm157_vm15, %v125_v38 }
  0xcc   :  { %170 = dma.vmem_to_hbm [thread:$0]  %s166_s1, 32, %s168_s26, [#allocation4]  }
  0xcd   :  { %v131_v41 = vrot.slane %v129_v40, 7 }
  0xcf   :  { %v133_v42 = vsub.f32 %v129_v40, %v131_v41 }
  0xd1   :  { %v134_v43 = vmul.f32 1.442695, %v133_v42 }
  0xd3   :  { %204 = vpow2.f32 %v134_v43 }
  0xd9   :  { %v205_v44 = vpop.eup %204 }
  0xda   :  { %v136_v45 = vadd.f32 1.0, %v205_v44 }
  0xdc   :  { %206 = vrcp.f32 %v136_v45  ;;  %v148_v49 = vand.u32 2147483648, %v136_v45  ;;  %v146_v51 = vand.u32 2147483647, %v136_v45  ;;  %vm142_vm2 = vweird.f32 %v136_v45 }
  0xde   :  { %v149_v53 = vor.u32 1.1754944e-38, %v148_v49  ;;  %vm147_vm4 = vcmp.eq.f32.partialorder %v146_v51, 8.507059e+37 }
  0xe2   :  { %v207_v46 = vpop.eup %206 }
  0xe3   :  { %v138_v47 = vmul.f32 %v207_v46, %v136_v45  ;;  %vm143_vm1 = vweird.f32 %v207_v46 }
  0xe4   :  { %vm144_vm3 = vmor %vm142_vm2, %vm143_vm1 }
  0xe5   :  { %v139_v48 = vsub.f32 1.0, %v138_v47 }
  0xe7   :  { %v140_v50 = vmul.f32 %v207_v46, %v139_v48 }
  0xe9   :  { %v141_v52 = vadd.f32 %v207_v46, %v140_v50 }
  0xeb   :  { %v145_v54 = vsel %vm144_vm3, %v207_v46, %v141_v52 }
  0xec   :  { %v150_v55 = vsel %vm147_vm4, %v149_v53, %v145_v54 }
  0xed   :  { %v152_v56 = vsub.f32 1.0, %v150_v55  ;;  %v154_v57 = vrot.slane %v150_v55, 1 }
  0xef   :  { %v156_v58 = vsel %vm122_vm13, %v154_v57, %v152_v56 }
  0xf0   :  { %159 = vst.msk [vmem:[#allocation8] sm:$0x3] %vm157_vm15, %v156_v58 }
  0xf1   :  { %181 = dma.vmem_to_hbm [thread:$0]  %s177_s27, 32, %s179_s30, [#allocation9]  }
  0xf2   :  { %308 = dma.done.wait [#allocation4], 32  }
  0xf3   :  { %309 = vsyncadd [#allocation4], 4294967264 }
  0xf4   :  { %310 = dma.done.wait [#allocation9], 32  }
  0xf5   :  { %311 = vsyncadd [#allocation9], 4294967264 }
  0xf6   :  { %190 = vsyncpa [#allocation3], 1 }
  0xf7   :  { %191 = vsyncpa [#allocation6], 1 }
  0xf8   :  { %192 = vsyncpa [#allocation4], 1 }
  0xf9   :  { %193 = vsyncpa [#allocation9], 1 }

</bundles_post_ra>
